<compile_context>
chip_gen: v6e
topology: v6e:2x2x1
jax: 0.10.0
libtpu: 0.0.40
codegen_flags: <defaults>
</compile_context>

<pallas_src>
import functools

import jax
import jax.numpy as jnp
from jax.experimental import pallas as pl
from jax.experimental.pallas import tpu as pltpu

EPS = 1e-6  # LayerNorm eps (eps_inside=False -> added to std, outside sqrt)


def embedding_kernel(src_ids_ref,      # SMEM  (N,)      int32   (scalar prefetch)
                     seg_ref,          # VMEM  (T, 1)    int32
                     word_hbm,         # HBM   (V, Hp)   f32     (memory_space=ANY)
                     pos_ref,          # VMEM  (T, Hp)   f32     (contiguous pos rows)
                     seg_tbl_ref,      # VMEM  (NS, Hp)  f32     (tiny, resident)
                     gamma_ref,        # VMEM  (1, Hp)   f32     (resident)
                     beta_ref,         # VMEM  (1, Hp)   f32     (resident)
                     out_ref,          # VMEM  (T, Hp)   f32
                     gbuf,             # VMEM scratch (T, Hp) f32: gathered word rows
                     sem,              # DMA semaphore (1,)
                     *, H, S, T):
    Hp = out_ref.shape[1]
    b = pl.program_id(0)              # batch index
    j = pl.program_id(1)              # tile index within the sequence
    base = b * S + j * T              # flattened token-row offset of this tile

    # 1) Word embedding = true row gather: one small HBM->VMEM DMA per token,
    #    addressed from the scalar-prefetched ids in SMEM.
    #    (T is small & static; for large tiles use lax.fori_loop(unroll=True).)
    for r in range(T):
        tok = src_ids_ref[base + r]
        pltpu.make_async_copy(word_hbm.at[tok], gbuf.at[r], sem.at[0]).start()

    # 2) While those DMAs are in flight: position rows arrived via the pipelined
    #    BlockSpec, and the tiny segment table is a VPU select (no MXU).
    seg_ids = seg_ref[...]                                   # (T, 1) int32
    partial = pos_ref[...]                                   # (T, Hp) f32
    for s in range(seg_tbl_ref.shape[0]):                    # NS is tiny (e.g. 3)
        row = seg_tbl_ref[pl.ds(s, 1), :]                    # (1, Hp)
        partial = partial + jnp.where(seg_ids == s, 1.0, 0.0) * row

    # 3) Land the gathered word rows and finish the embedding sum.
    for r in range(T):
        pltpu.make_async_copy(word_hbm.at[0], gbuf.at[r], sem.at[0]).wait()
    emb = gbuf[...] + partial                                # (T, Hp) f32

    # 4) LayerNorm epilogue, matching the module exactly:
    #    unbiased variance (H - 1), eps added OUTSIDE the sqrt.
    #    Lanes >= H are zero padding -> exclude them from the variance.
    lane = jax.lax.broadcasted_iota(jnp.int32, (T, Hp), 1)
    mean = jnp.sum(emb, axis=-1, keepdims=True) * (1.0 / H)  # pad lanes are exactly 0
    centered = emb - mean
    csq = jnp.where(lane < H, centered * centered, 0.0)
    var = jnp.sum(csq, axis=-1, keepdims=True) * (1.0 / (H - 1))
    std = jnp.sqrt(var) + EPS
    # EUP approximate reciprocal (keeps the divide off the VALU), refined with
    # two Newton steps on the (T, 1) column only -> ~f32-exact, negligible cost.
    inv_std = pl.reciprocal(std, approx=True)
    inv_std = inv_std * (2.0 - std * inv_std)
    inv_std = inv_std * (2.0 - std * inv_std)

    # TODO(synk): dropout left as identity (eval mode); training-mode dropout
    # would use pltpu.prng_seed / pltpu.prng_random_bits here.
    out_ref[...] = gamma_ref[...] * (centered * inv_std) + beta_ref[...]


def _choose_row_tile(seq_len, cap=256):
    """Largest multiple-of-8 row tile that divides the sequence length."""
    best = None
    t = 8
    while t <= min(seq_len, cap):
        if seq_len % t == 0:
            best = t
        t += 8
    return best


def embedding_forward(src, seg, word_tbl, pos_tbl, seg_tbl, gamma, beta):
    B, S = src.shape
    _, H = word_tbl.shape

    T = _choose_row_tile(S)
    # TODO(synk): sequence lengths that are not a multiple of 8 would need a
    # padded/ragged tile path; not required for this module's test shapes.
    assert T is not None, "seq length must be a multiple of 8"
    tiles_per_seq = S // T
    N = B * S

    # Lane-dense layout: pad hidden to a multiple of 128 so stores are unmasked.
    Hp = ((H + 127) // 128) * 128
    pad = Hp - H
    f32 = jnp.float32
    word_p = jnp.pad(word_tbl.astype(f32), ((0, 0), (0, pad)))
    pos_p = jnp.pad(pos_tbl.astype(f32), ((0, 0), (0, pad)))
    seg_p = jnp.pad(seg_tbl.astype(f32), ((0, 0), (0, pad)))
    gamma_p = jnp.pad(gamma.astype(f32), (0, pad)).reshape(1, Hp)
    beta_p = jnp.pad(beta.astype(f32), (0, pad)).reshape(1, Hp)

    src_ids = src.reshape(N).astype(jnp.int32)      # scalar-prefetched -> SMEM
    seg_ids = seg.reshape(N, 1).astype(jnp.int32)   # tiled VMEM input

    kernel = functools.partial(embedding_kernel, H=H, S=S, T=T)

    grid_spec = pltpu.PrefetchScalarGridSpec(
        num_scalar_prefetch=1,
        grid=(B, tiles_per_seq),
        in_specs=[
            # per-tile segment ids (selected against the tiny resident table)
            pl.BlockSpec((T, 1), lambda b, j, ids: (b * tiles_per_seq + j, 0)),
            # word table stays in HBM; rows are DMA-gathered inside the kernel
            pl.BlockSpec(memory_space=pl.ANY),
            # positions inside a tile are consecutive -> plain contiguous slice
            pl.BlockSpec((T, Hp), lambda b, j, ids: (j, 0)),
            # tiny tables / LN params: resident, reused every step
            pl.BlockSpec((seg_p.shape[0], Hp), lambda b, j, ids: (0, 0)),
            pl.BlockSpec((1, Hp), lambda b, j, ids: (0, 0)),
            pl.BlockSpec((1, Hp), lambda b, j, ids: (0, 0)),
        ],
        out_specs=pl.BlockSpec((T, Hp), lambda b, j, ids: (b * tiles_per_seq + j, 0)),
        scratch_shapes=[
            pltpu.VMEM((T, Hp), f32),          # gathered word-embedding rows
            pltpu.SemaphoreType.DMA((1,)),     # completion sem for the row gather
        ],
    )

    out = pl.pallas_call(
        kernel,
        out_shape=jax.ShapeDtypeStruct((N, Hp), f32),
        grid_spec=grid_spec,
        compiler_params=pltpu.CompilerParams(
            dimension_semantics=("parallel", "parallel"),
            vmem_limit_bytes=32 * 1024 * 1024,
        ),
    )(src_ids, seg_ids, word_p, pos_p, seg_p, gamma_p, beta_p)

    return out[:, :H].reshape(B, S, H)


def _reference(src, seg, word_tbl, pos_tbl, seg_tbl, gamma, beta):
    B, S = src.shape
    pos_ids = jnp.broadcast_to(jnp.arange(S), (B, S))
    emb = (word_tbl[src] + pos_tbl[pos_ids] + seg_tbl[seg]).astype(jnp.float32)
    mean = emb.mean(-1, keepdims=True)
    var = ((emb - mean) ** 2).sum(-1, keepdims=True) / (emb.shape[-1] - 1)
    std = jnp.sqrt(var) + EPS
    return gamma * (emb - mean) / std + beta


if __name__ == "__main__":
    B, S, H = 2, 8, 32        # batch, seq, emb_size
    V, MAX_SEQ, NSEG = 64, 16, 3

    key = jax.random.PRNGKey(0)
    k_w, k_p, k_s, k_src, k_seg = jax.random.split(key, 5)

    word_tbl = (0.02 * jax.random.normal(k_w, (V, H))).astype(jnp.float32)
    pos_tbl = (0.02 * jax.random.normal(k_p, (MAX_SEQ, H))).astype(jnp.float32)
    seg_tbl = (0.02 * jax.random.normal(k_s, (NSEG, H))).astype(jnp.float32)
    gamma = jnp.ones((H,), jnp.float32)
    beta = jnp.zeros((H,), jnp.float32)

    src = jax.random.randint(k_src, (B, S), 0, V, dtype=jnp.int32)
    seg = jax.random.randint(k_seg, (B, S), 0, NSEG, dtype=jnp.int32)

    out = embedding_forward(src, seg, word_tbl, pos_tbl, seg_tbl, gamma, beta)
    jax.block_until_ready(out)

    ref = _reference(src, seg, word_tbl, pos_tbl, seg_tbl, gamma, beta)
    assert out.shape == (B, S, H)
    assert jnp.allclose(out, ref, atol=1e-4, rtol=1e-4), \
        f"max err {jnp.max(jnp.abs(out - ref))}"

    print("KERNEL_OK")
</pallas_src>

<mosaic_0001>
module attributes {stable_mosaic.version = 11 : i64} {
  func.func @embedding_kernel(%arg0: i32, %arg1: i32, %arg2: memref<16xi32, #tpu.memory_space<smem>>, %arg3: memref<8x1xi32, #tpu.memory_space<vmem>>, %arg4: memref<64x128xf32, #tpu.memory_space<any>>, %arg5: memref<8x128xf32, #tpu.memory_space<vmem>>, %arg6: memref<3x128xf32, #tpu.memory_space<vmem>>, %arg7: memref<1x128xf32, #tpu.memory_space<vmem>>, %arg8: memref<1x128xf32, #tpu.memory_space<vmem>>, %arg9: memref<8x128xf32, #tpu.memory_space<vmem>>, %arg10: memref<8x128xf32, #tpu.memory_space<vmem>>, %arg11: memref<1x!tpu.dma_semaphore, #tpu.memory_space<semaphore_mem>>) attributes {dimension_semantics = [#tpu.dimension_semantics<parallel>, #tpu.dimension_semantics<parallel>], iteration_bounds = array<i64: 2, 1>, scalar_prefetch = 1 : i64, scratch_operands = 2 : i64, tpu.core_type = #tpu.core_type<tc>, window_params = [{transform_indices = @transform_0, window_bounds = array<i64: 8, 1>}, {}, {transform_indices = @transform_2, window_bounds = array<i64: 8, 128>}, {pipeline_mode = #tpu.pipeline_mode<synchronous>, transform_indices = @transform_3, window_bounds = array<i64: 3, 128>}, {pipeline_mode = #tpu.pipeline_mode<synchronous>, transform_indices = @transform_4, window_bounds = array<i64: 1, 128>}, {pipeline_mode = #tpu.pipeline_mode<synchronous>, transform_indices = @transform_5, window_bounds = array<i64: 1, 128>}, {transform_indices = @transform_6, window_bounds = array<i64: 8, 128>}]} {
    %c8_i32 = arith.constant 8 : i32
    %0 = arith.muli %arg0, %c8_i32 : i32
    %c8_i32_0 = arith.constant 8 : i32
    %1 = arith.muli %arg1, %c8_i32_0 : i32
    %2 = arith.addi %0, %1 : i32
    %c0_i32 = arith.constant 0 : i32
    %3 = arith.addi %2, %c0_i32 : i32
    %4 = arith.index_cast %3 : i32 to index
    %5 = memref.load %arg2[%4] : memref<16xi32, #tpu.memory_space<smem>>
    %c0_i32_1 = arith.constant 0 : i32
    %c0_i32_2 = arith.constant 0 : i32
    %c0_i32_3 = arith.constant 0 : i32
    %6 = tpu.memref_slice %arg4[%5, %c0_i32_3] : memref<64x128xf32, #tpu.memory_space<any>> -> memref<1x128xf32, #tpu.memory_space<any>>
    %7 = tpu.memref_squeeze %6 : memref<1x128xf32, #tpu.memory_space<any>> -> memref<128xf32, #tpu.memory_space<any>>
    %c0_i32_4 = arith.constant 0 : i32
    %8 = tpu.memref_slice %arg10[%c0_i32_1, %c0_i32_4] : memref<8x128xf32, #tpu.memory_space<vmem>> -> memref<1x128xf32, #tpu.memory_space<vmem>>
    %9 = tpu.memref_squeeze %8 : memref<1x128xf32, #tpu.memory_space<vmem>> -> memref<128xf32, #tpu.memory_space<vmem>>
    %10 = tpu.memref_slice %arg11[%c0_i32_2] : memref<1x!tpu.dma_semaphore, #tpu.memory_space<semaphore_mem>> -> memref<1x!tpu.dma_semaphore, #tpu.memory_space<semaphore_mem>>
    %11 = tpu.memref_squeeze %10 : memref<1x!tpu.dma_semaphore, #tpu.memory_space<semaphore_mem>> -> memref<!tpu.dma_semaphore, #tpu.memory_space<semaphore_mem>>
    tpu.enqueue_dma source(%7 : memref<128xf32, #tpu.memory_space<any>>) target(%9 : memref<128xf32, #tpu.memory_space<vmem>>) target_semaphore(%11 : memref<!tpu.dma_semaphore, #tpu.memory_space<semaphore_mem>>)
    %c1_i32 = arith.constant 1 : i32
    %12 = arith.addi %2, %c1_i32 : i32
    %13 = arith.index_cast %12 : i32 to index
    %14 = memref.load %arg2[%13] : memref<16xi32, #tpu.memory_space<smem>>
    %c1_i32_5 = arith.constant 1 : i32
    %c0_i32_6 = arith.constant 0 : i32
    %c0_i32_7 = arith.constant 0 : i32
    %15 = tpu.memref_slice %arg4[%14, %c0_i32_7] : memref<64x128xf32, #tpu.memory_space<any>> -> memref<1x128xf32, #tpu.memory_space<any>>
    %16 = tpu.memref_squeeze %15 : memref<1x128xf32, #tpu.memory_space<any>> -> memref<128xf32, #tpu.memory_space<any>>
    %c0_i32_8 = arith.constant 0 : i32
    %17 = tpu.memref_slice %arg10[%c1_i32_5, %c0_i32_8] : memref<8x128xf32, #tpu.memory_space<vmem>> -> memref<1x128xf32, #tpu.memory_space<vmem>>
    %18 = tpu.memref_squeeze %17 : memref<1x128xf32, #tpu.memory_space<vmem>> -> memref<128xf32, #tpu.memory_space<vmem>>
    %19 = tpu.memref_slice %arg11[%c0_i32_6] : memref<1x!tpu.dma_semaphore, #tpu.memory_space<semaphore_mem>> -> memref<1x!tpu.dma_semaphore, #tpu.memory_space<semaphore_mem>>
    %20 = tpu.memref_squeeze %19 : memref<1x!tpu.dma_semaphore, #tpu.memory_space<semaphore_mem>> -> memref<!tpu.dma_semaphore, #tpu.memory_space<semaphore_mem>>
    tpu.enqueue_dma source(%16 : memref<128xf32, #tpu.memory_space<any>>) target(%18 : memref<128xf32, #tpu.memory_space<vmem>>) target_semaphore(%20 : memref<!tpu.dma_semaphore, #tpu.memory_space<semaphore_mem>>)
    %c2_i32 = arith.constant 2 : i32
    %21 = arith.addi %2, %c2_i32 : i32
    %22 = arith.index_cast %21 : i32 to index
    %23 = memref.load %arg2[%22] : memref<16xi32, #tpu.memory_space<smem>>
    %c2_i32_9 = arith.constant 2 : i32
    %c0_i32_10 = arith.constant 0 : i32
    %c0_i32_11 = arith.constant 0 : i32
    %24 = tpu.memref_slice %arg4[%23, %c0_i32_11] : memref<64x128xf32, #tpu.memory_space<any>> -> memref<1x128xf32, #tpu.memory_space<any>>
    %25 = tpu.memref_squeeze %24 : memref<1x128xf32, #tpu.memory_space<any>> -> memref<128xf32, #tpu.memory_space<any>>
    %c0_i32_12 = arith.constant 0 : i32
    %26 = tpu.memref_slice %arg10[%c2_i32_9, %c0_i32_12] : memref<8x128xf32, #tpu.memory_space<vmem>> -> memref<1x128xf32, #tpu.memory_space<vmem>>
    %27 = tpu.memref_squeeze %26 : memref<1x128xf32, #tpu.memory_space<vmem>> -> memref<128xf32, #tpu.memory_space<vmem>>
    %28 = tpu.memref_slice %arg11[%c0_i32_10] : memref<1x!tpu.dma_semaphore, #tpu.memory_space<semaphore_mem>> -> memref<1x!tpu.dma_semaphore, #tpu.memory_space<semaphore_mem>>
    %29 = tpu.memref_squeeze %28 : memref<1x!tpu.dma_semaphore, #tpu.memory_space<semaphore_mem>> -> memref<!tpu.dma_semaphore, #tpu.memory_space<semaphore_mem>>
    tpu.enqueue_dma source(%25 : memref<128xf32, #tpu.memory_space<any>>) target(%27 : memref<128xf32, #tpu.memory_space<vmem>>) target_semaphore(%29 : memref<!tpu.dma_semaphore, #tpu.memory_space<semaphore_mem>>)
    %c3_i32 = arith.constant 3 : i32
    %30 = arith.addi %2, %c3_i32 : i32
    %31 = arith.index_cast %30 : i32 to index
    %32 = memref.load %arg2[%31] : memref<16xi32, #tpu.memory_space<smem>>
    %c3_i32_13 = arith.constant 3 : i32
    %c0_i32_14 = arith.constant 0 : i32
    %c0_i32_15 = arith.constant 0 : i32
    %33 = tpu.memref_slice %arg4[%32, %c0_i32_15] : memref<64x128xf32, #tpu.memory_space<any>> -> memref<1x128xf32, #tpu.memory_space<any>>
    %34 = tpu.memref_squeeze %33 : memref<1x128xf32, #tpu.memory_space<any>> -> memref<128xf32, #tpu.memory_space<any>>
    %c0_i32_16 = arith.constant 0 : i32
    %35 = tpu.memref_slice %arg10[%c3_i32_13, %c0_i32_16] : memref<8x128xf32, #tpu.memory_space<vmem>> -> memref<1x128xf32, #tpu.memory_space<vmem>>
    %36 = tpu.memref_squeeze %35 : memref<1x128xf32, #tpu.memory_space<vmem>> -> memref<128xf32, #tpu.memory_space<vmem>>
    %37 = tpu.memref_slice %arg11[%c0_i32_14] : memref<1x!tpu.dma_semaphore, #tpu.memory_space<semaphore_mem>> -> memref<1x!tpu.dma_semaphore, #tpu.memory_space<semaphore_mem>>
    %38 = tpu.memref_squeeze %37 : memref<1x!tpu.dma_semaphore, #tpu.memory_space<semaphore_mem>> -> memref<!tpu.dma_semaphore, #tpu.memory_space<semaphore_mem>>
    tpu.enqueue_dma source(%34 : memref<128xf32, #tpu.memory_space<any>>) target(%36 : memref<128xf32, #tpu.memory_space<vmem>>) target_semaphore(%38 : memref<!tpu.dma_semaphore, #tpu.memory_space<semaphore_mem>>)
    %c4_i32 = arith.constant 4 : i32
    %39 = arith.addi %2, %c4_i32 : i32
    %40 = arith.index_cast %39 : i32 to index
    %41 = memref.load %arg2[%40] : memref<16xi32, #tpu.memory_space<smem>>
    %c4_i32_17 = arith.constant 4 : i32
    %c0_i32_18 = arith.constant 0 : i32
    %c0_i32_19 = arith.constant 0 : i32
    %42 = tpu.memref_slice %arg4[%41, %c0_i32_19] : memref<64x128xf32, #tpu.memory_space<any>> -> memref<1x128xf32, #tpu.memory_space<any>>
    %43 = tpu.memref_squeeze %42 : memref<1x128xf32, #tpu.memory_space<any>> -> memref<128xf32, #tpu.memory_space<any>>
    %c0_i32_20 = arith.constant 0 : i32
    %44 = tpu.memref_slice %arg10[%c4_i32_17, %c0_i32_20] : memref<8x128xf32, #tpu.memory_space<vmem>> -> memref<1x128xf32, #tpu.memory_space<vmem>>
    %45 = tpu.memref_squeeze %44 : memref<1x128xf32, #tpu.memory_space<vmem>> -> memref<128xf32, #tpu.memory_space<vmem>>
    %46 = tpu.memref_slice %arg11[%c0_i32_18] : memref<1x!tpu.dma_semaphore, #tpu.memory_space<semaphore_mem>> -> memref<1x!tpu.dma_semaphore, #tpu.memory_space<semaphore_mem>>
    %47 = tpu.memref_squeeze %46 : memref<1x!tpu.dma_semaphore, #tpu.memory_space<semaphore_mem>> -> memref<!tpu.dma_semaphore, #tpu.memory_space<semaphore_mem>>
    tpu.enqueue_dma source(%43 : memref<128xf32, #tpu.memory_space<any>>) target(%45 : memref<128xf32, #tpu.memory_space<vmem>>) target_semaphore(%47 : memref<!tpu.dma_semaphore, #tpu.memory_space<semaphore_mem>>)
    %c5_i32 = arith.constant 5 : i32
    %48 = arith.addi %2, %c5_i32 : i32
    %49 = arith.index_cast %48 : i32 to index
    %50 = memref.load %arg2[%49] : memref<16xi32, #tpu.memory_space<smem>>
    %c5_i32_21 = arith.constant 5 : i32
    %c0_i32_22 = arith.constant 0 : i32
    %c0_i32_23 = arith.constant 0 : i32
    %51 = tpu.memref_slice %arg4[%50, %c0_i32_23] : memref<64x128xf32, #tpu.memory_space<any>> -> memref<1x128xf32, #tpu.memory_space<any>>
    %52 = tpu.memref_squeeze %51 : memref<1x128xf32, #tpu.memory_space<any>> -> memref<128xf32, #tpu.memory_space<any>>
    %c0_i32_24 = arith.constant 0 : i32
    %53 = tpu.memref_slice %arg10[%c5_i32_21, %c0_i32_24] : memref<8x128xf32, #tpu.memory_space<vmem>> -> memref<1x128xf32, #tpu.memory_space<vmem>>
    %54 = tpu.memref_squeeze %53 : memref<1x128xf32, #tpu.memory_space<vmem>> -> memref<128xf32, #tpu.memory_space<vmem>>
    %55 = tpu.memref_slice %arg11[%c0_i32_22] : memref<1x!tpu.dma_semaphore, #tpu.memory_space<semaphore_mem>> -> memref<1x!tpu.dma_semaphore, #tpu.memory_space<semaphore_mem>>
    %56 = tpu.memref_squeeze %55 : memref<1x!tpu.dma_semaphore, #tpu.memory_space<semaphore_mem>> -> memref<!tpu.dma_semaphore, #tpu.memory_space<semaphore_mem>>
    tpu.enqueue_dma source(%52 : memref<128xf32, #tpu.memory_space<any>>) target(%54 : memref<128xf32, #tpu.memory_space<vmem>>) target_semaphore(%56 : memref<!tpu.dma_semaphore, #tpu.memory_space<semaphore_mem>>)
    %c6_i32 = arith.constant 6 : i32
    %57 = arith.addi %2, %c6_i32 : i32
    %58 = arith.index_cast %57 : i32 to index
    %59 = memref.load %arg2[%58] : memref<16xi32, #tpu.memory_space<smem>>
    %c6_i32_25 = arith.constant 6 : i32
    %c0_i32_26 = arith.constant 0 : i32
    %c0_i32_27 = arith.constant 0 : i32
    %60 = tpu.memref_slice %arg4[%59, %c0_i32_27] : memref<64x128xf32, #tpu.memory_space<any>> -> memref<1x128xf32, #tpu.memory_space<any>>
    %61 = tpu.memref_squeeze %60 : memref<1x128xf32, #tpu.memory_space<any>> -> memref<128xf32, #tpu.memory_space<any>>
    %c0_i32_28 = arith.constant 0 : i32
    %62 = tpu.memref_slice %arg10[%c6_i32_25, %c0_i32_28] : memref<8x128xf32, #tpu.memory_space<vmem>> -> memref<1x128xf32, #tpu.memory_space<vmem>>
    %63 = tpu.memref_squeeze %62 : memref<1x128xf32, #tpu.memory_space<vmem>> -> memref<128xf32, #tpu.memory_space<vmem>>
    %64 = tpu.memref_slice %arg11[%c0_i32_26] : memref<1x!tpu.dma_semaphore, #tpu.memory_space<semaphore_mem>> -> memref<1x!tpu.dma_semaphore, #tpu.memory_space<semaphore_mem>>
    %65 = tpu.memref_squeeze %64 : memref<1x!tpu.dma_semaphore, #tpu.memory_space<semaphore_mem>> -> memref<!tpu.dma_semaphore, #tpu.memory_space<semaphore_mem>>
    tpu.enqueue_dma source(%61 : memref<128xf32, #tpu.memory_space<any>>) target(%63 : memref<128xf32, #tpu.memory_space<vmem>>) target_semaphore(%65 : memref<!tpu.dma_semaphore, #tpu.memory_space<semaphore_mem>>)
    %c7_i32 = arith.constant 7 : i32
    %66 = arith.addi %2, %c7_i32 : i32
    %67 = arith.index_cast %66 : i32 to index
    %68 = memref.load %arg2[%67] : memref<16xi32, #tpu.memory_space<smem>>
    %c7_i32_29 = arith.constant 7 : i32
    %c0_i32_30 = arith.constant 0 : i32
    %c0_i32_31 = arith.constant 0 : i32
    %69 = tpu.memref_slice %arg4[%68, %c0_i32_31] : memref<64x128xf32, #tpu.memory_space<any>> -> memref<1x128xf32, #tpu.memory_space<any>>
    %70 = tpu.memref_squeeze %69 : memref<1x128xf32, #tpu.memory_space<any>> -> memref<128xf32, #tpu.memory_space<any>>
    %c0_i32_32 = arith.constant 0 : i32
    %71 = tpu.memref_slice %arg10[%c7_i32_29, %c0_i32_32] : memref<8x128xf32, #tpu.memory_space<vmem>> -> memref<1x128xf32, #tpu.memory_space<vmem>>
    %72 = tpu.memref_squeeze %71 : memref<1x128xf32, #tpu.memory_space<vmem>> -> memref<128xf32, #tpu.memory_space<vmem>>
    %73 = tpu.memref_slice %arg11[%c0_i32_30] : memref<1x!tpu.dma_semaphore, #tpu.memory_space<semaphore_mem>> -> memref<1x!tpu.dma_semaphore, #tpu.memory_space<semaphore_mem>>
    %74 = tpu.memref_squeeze %73 : memref<1x!tpu.dma_semaphore, #tpu.memory_space<semaphore_mem>> -> memref<!tpu.dma_semaphore, #tpu.memory_space<semaphore_mem>>
    tpu.enqueue_dma source(%70 : memref<128xf32, #tpu.memory_space<any>>) target(%72 : memref<128xf32, #tpu.memory_space<vmem>>) target_semaphore(%74 : memref<!tpu.dma_semaphore, #tpu.memory_space<semaphore_mem>>)
    %c0 = arith.constant 0 : index
    %c0_33 = arith.constant 0 : index
    %75 = vector.load %arg3[%c0, %c0_33] : memref<8x1xi32, #tpu.memory_space<vmem>>, vector<8x1xi32>
    %c0_34 = arith.constant 0 : index
    %c0_35 = arith.constant 0 : index
    %76 = vector.load %arg5[%c0_34, %c0_35] : memref<8x128xf32, #tpu.memory_space<vmem>>, vector<8x128xf32>
    %c0_36 = arith.constant 0 : index
    %c0_37 = arith.constant 0 : index
    %77 = vector.load %arg6[%c0_36, %c0_37] : memref<3x128xf32, #tpu.memory_space<vmem>>, vector<1x128xf32>
    %c0_i32_38 = arith.constant 0 : i32
    %78 = vector.broadcast %c0_i32_38 : i32 to vector<8x1xi32>
    %79 = arith.cmpi eq, %75, %78 : vector<8x1xi32>
    %cst = arith.constant 1.000000e+00 : f32
    %cst_39 = arith.constant 0.000000e+00 : f32
    %80 = vector.broadcast %cst : f32 to vector<8x1xf32>
    %81 = vector.broadcast %cst_39 : f32 to vector<8x1xf32>
    %82 = arith.select %79, %80, %81 : vector<8x1xi1>, vector<8x1xf32>
    %83 = vector.broadcast %82 : vector<8x1xf32> to vector<8x128xf32>
    %84 = vector.broadcast %77 : vector<1x128xf32> to vector<8x128xf32>
    %85 = arith.mulf %83, %84 : vector<8x128xf32>
    %86 = arith.addf %76, %85 : vector<8x128xf32>
    %c1 = arith.constant 1 : index
    %c0_40 = arith.constant 0 : index
    %87 = vector.load %arg6[%c1, %c0_40] : memref<3x128xf32, #tpu.memory_space<vmem>>, vector<1x128xf32>
    %c1_i32_41 = arith.constant 1 : i32
    %88 = vector.broadcast %c1_i32_41 : i32 to vector<8x1xi32>
    %89 = arith.cmpi eq, %75, %88 : vector<8x1xi32>
    %cst_42 = arith.constant 1.000000e+00 : f32
    %cst_43 = arith.constant 0.000000e+00 : f32
    %90 = vector.broadcast %cst_42 : f32 to vector<8x1xf32>
    %91 = vector.broadcast %cst_43 : f32 to vector<8x1xf32>
    %92 = arith.select %89, %90, %91 : vector<8x1xi1>, vector<8x1xf32>
    %93 = vector.broadcast %92 : vector<8x1xf32> to vector<8x128xf32>
    %94 = vector.broadcast %87 : vector<1x128xf32> to vector<8x128xf32>
    %95 = arith.mulf %93, %94 : vector<8x128xf32>
    %96 = arith.addf %86, %95 : vector<8x128xf32>
    %c2 = arith.constant 2 : index
    %c0_44 = arith.constant 0 : index
    %97 = vector.load %arg6[%c2, %c0_44] : memref<3x128xf32, #tpu.memory_space<vmem>>, vector<1x128xf32>
    %c2_i32_45 = arith.constant 2 : i32
    %98 = vector.broadcast %c2_i32_45 : i32 to vector<8x1xi32>
    %99 = arith.cmpi eq, %75, %98 : vector<8x1xi32>
    %cst_46 = arith.constant 1.000000e+00 : f32
    %cst_47 = arith.constant 0.000000e+00 : f32
    %100 = vector.broadcast %cst_46 : f32 to vector<8x1xf32>
    %101 = vector.broadcast %cst_47 : f32 to vector<8x1xf32>
    %102 = arith.select %99, %100, %101 : vector<8x1xi1>, vector<8x1xf32>
    %103 = vector.broadcast %102 : vector<8x1xf32> to vector<8x128xf32>
    %104 = vector.broadcast %97 : vector<1x128xf32> to vector<8x128xf32>
    %105 = arith.mulf %103, %104 : vector<8x128xf32>
    %106 = arith.addf %96, %105 : vector<8x128xf32>
    %c0_i32_48 = arith.constant 0 : i32
    %c0_i32_49 = arith.constant 0 : i32
    %c0_i32_50 = arith.constant 0 : i32
    %c0_i32_51 = arith.constant 0 : i32
    %107 = tpu.memref_slice %arg4[%c0_i32_48, %c0_i32_51] : memref<64x128xf32, #tpu.memory_space<any>> -> memref<1x128xf32, #tpu.memory_space<any>>
    %108 = tpu.memref_squeeze %107 : memref<1x128xf32, #tpu.memory_space<any>> -> memref<128xf32, #tpu.memory_space<any>>
    %c0_i32_52 = arith.constant 0 : i32
    %109 = tpu.memref_slice %arg10[%c0_i32_49, %c0_i32_52] : memref<8x128xf32, #tpu.memory_space<vmem>> -> memref<1x128xf32, #tpu.memory_space<vmem>>
    %110 = tpu.memref_squeeze %109 : memref<1x128xf32, #tpu.memory_space<vmem>> -> memref<128xf32, #tpu.memory_space<vmem>>
    %111 = tpu.memref_slice %arg11[%c0_i32_50] : memref<1x!tpu.dma_semaphore, #tpu.memory_space<semaphore_mem>> -> memref<1x!tpu.dma_semaphore, #tpu.memory_space<semaphore_mem>>
    %112 = tpu.memref_squeeze %111 : memref<1x!tpu.dma_semaphore, #tpu.memory_space<semaphore_mem>> -> memref<!tpu.dma_semaphore, #tpu.memory_space<semaphore_mem>>
    tpu.wait_dma2 semaphore(%112 : memref<!tpu.dma_semaphore, #tpu.memory_space<semaphore_mem>>) src(%108 : memref<128xf32, #tpu.memory_space<any>>) dst(%110 : memref<128xf32, #tpu.memory_space<vmem>>)
    %c0_i32_53 = arith.constant 0 : i32
    %c1_i32_54 = arith.constant 1 : i32
    %c0_i32_55 = arith.constant 0 : i32
    %c0_i32_56 = arith.constant 0 : i32
    %113 = tpu.memref_slice %arg4[%c0_i32_53, %c0_i32_56] : memref<64x128xf32, #tpu.memory_space<any>> -> memref<1x128xf32, #tpu.memory_space<any>>
    %114 = tpu.memref_squeeze %113 : memref<1x128xf32, #tpu.memory_space<any>> -> memref<128xf32, #tpu.memory_space<any>>
    %c0_i32_57 = arith.constant 0 : i32
    %115 = tpu.memref_slice %arg10[%c1_i32_54, %c0_i32_57] : memref<8x128xf32, #tpu.memory_space<vmem>> -> memref<1x128xf32, #tpu.memory_space<vmem>>
    %116 = tpu.memref_squeeze %115 : memref<1x128xf32, #tpu.memory_space<vmem>> -> memref<128xf32, #tpu.memory_space<vmem>>
    %117 = tpu.memref_slice %arg11[%c0_i32_55] : memref<1x!tpu.dma_semaphore, #tpu.memory_space<semaphore_mem>> -> memref<1x!tpu.dma_semaphore, #tpu.memory_space<semaphore_mem>>
    %118 = tpu.memref_squeeze %117 : memref<1x!tpu.dma_semaphore, #tpu.memory_space<semaphore_mem>> -> memref<!tpu.dma_semaphore, #tpu.memory_space<semaphore_mem>>
    tpu.wait_dma2 semaphore(%118 : memref<!tpu.dma_semaphore, #tpu.memory_space<semaphore_mem>>) src(%114 : memref<128xf32, #tpu.memory_space<any>>) dst(%116 : memref<128xf32, #tpu.memory_space<vmem>>)
    %c0_i32_58 = arith.constant 0 : i32
    %c2_i32_59 = arith.constant 2 : i32
    %c0_i32_60 = arith.constant 0 : i32
    %c0_i32_61 = arith.constant 0 : i32
    %119 = tpu.memref_slice %arg4[%c0_i32_58, %c0_i32_61] : memref<64x128xf32, #tpu.memory_space<any>> -> memref<1x128xf32, #tpu.memory_space<any>>
    %120 = tpu.memref_squeeze %119 : memref<1x128xf32, #tpu.memory_space<any>> -> memref<128xf32, #tpu.memory_space<any>>
    %c0_i32_62 = arith.constant 0 : i32
    %121 = tpu.memref_slice %arg10[%c2_i32_59, %c0_i32_62] : memref<8x128xf32, #tpu.memory_space<vmem>> -> memref<1x128xf32, #tpu.memory_space<vmem>>
    %122 = tpu.memref_squeeze %121 : memref<1x128xf32, #tpu.memory_space<vmem>> -> memref<128xf32, #tpu.memory_space<vmem>>
    %123 = tpu.memref_slice %arg11[%c0_i32_60] : memref<1x!tpu.dma_semaphore, #tpu.memory_space<semaphore_mem>> -> memref<1x!tpu.dma_semaphore, #tpu.memory_space<semaphore_mem>>
    %124 = tpu.memref_squeeze %123 : memref<1x!tpu.dma_semaphore, #tpu.memory_space<semaphore_mem>> -> memref<!tpu.dma_semaphore, #tpu.memory_space<semaphore_mem>>
    tpu.wait_dma2 semaphore(%124 : memref<!tpu.dma_semaphore, #tpu.memory_space<semaphore_mem>>) src(%120 : memref<128xf32, #tpu.memory_space<any>>) dst(%122 : memref<128xf32, #tpu.memory_space<vmem>>)
    %c0_i32_63 = arith.constant 0 : i32
    %c3_i32_64 = arith.constant 3 : i32
    %c0_i32_65 = arith.constant 0 : i32
    %c0_i32_66 = arith.constant 0 : i32
    %125 = tpu.memref_slice %arg4[%c0_i32_63, %c0_i32_66] : memref<64x128xf32, #tpu.memory_space<any>> -> memref<1x128xf32, #tpu.memory_space<any>>
    %126 = tpu.memref_squeeze %125 : memref<1x128xf32, #tpu.memory_space<any>> -> memref<128xf32, #tpu.memory_space<any>>
    %c0_i32_67 = arith.constant 0 : i32
    %127 = tpu.memref_slice %arg10[%c3_i32_64, %c0_i32_67] : memref<8x128xf32, #tpu.memory_space<vmem>> -> memref<1x128xf32, #tpu.memory_space<vmem>>
    %128 = tpu.memref_squeeze %127 : memref<1x128xf32, #tpu.memory_space<vmem>> -> memref<128xf32, #tpu.memory_space<vmem>>
    %129 = tpu.memref_slice %arg11[%c0_i32_65] : memref<1x!tpu.dma_semaphore, #tpu.memory_space<semaphore_mem>> -> memref<1x!tpu.dma_semaphore, #tpu.memory_space<semaphore_mem>>
    %130 = tpu.memref_squeeze %129 : memref<1x!tpu.dma_semaphore, #tpu.memory_space<semaphore_mem>> -> memref<!tpu.dma_semaphore, #tpu.memory_space<semaphore_mem>>
    tpu.wait_dma2 semaphore(%130 : memref<!tpu.dma_semaphore, #tpu.memory_space<semaphore_mem>>) src(%126 : memref<128xf32, #tpu.memory_space<any>>) dst(%128 : memref<128xf32, #tpu.memory_space<vmem>>)
    %c0_i32_68 = arith.constant 0 : i32
    %c4_i32_69 = arith.constant 4 : i32
    %c0_i32_70 = arith.constant 0 : i32
    %c0_i32_71 = arith.constant 0 : i32
    %131 = tpu.memref_slice %arg4[%c0_i32_68, %c0_i32_71] : memref<64x128xf32, #tpu.memory_space<any>> -> memref<1x128xf32, #tpu.memory_space<any>>
    %132 = tpu.memref_squeeze %131 : memref<1x128xf32, #tpu.memory_space<any>> -> memref<128xf32, #tpu.memory_space<any>>
    %c0_i32_72 = arith.constant 0 : i32
    %133 = tpu.memref_slice %arg10[%c4_i32_69, %c0_i32_72] : memref<8x128xf32, #tpu.memory_space<vmem>> -> memref<1x128xf32, #tpu.memory_space<vmem>>
    %134 = tpu.memref_squeeze %133 : memref<1x128xf32, #tpu.memory_space<vmem>> -> memref<128xf32, #tpu.memory_space<vmem>>
    %135 = tpu.memref_slice %arg11[%c0_i32_70] : memref<1x!tpu.dma_semaphore, #tpu.memory_space<semaphore_mem>> -> memref<1x!tpu.dma_semaphore, #tpu.memory_space<semaphore_mem>>
    %136 = tpu.memref_squeeze %135 : memref<1x!tpu.dma_semaphore, #tpu.memory_space<semaphore_mem>> -> memref<!tpu.dma_semaphore, #tpu.memory_space<semaphore_mem>>
    tpu.wait_dma2 semaphore(%136 : memref<!tpu.dma_semaphore, #tpu.memory_space<semaphore_mem>>) src(%132 : memref<128xf32, #tpu.memory_space<any>>) dst(%134 : memref<128xf32, #tpu.memory_space<vmem>>)
    %c0_i32_73 = arith.constant 0 : i32
    %c5_i32_74 = arith.constant 5 : i32
    %c0_i32_75 = arith.constant 0 : i32
    %c0_i32_76 = arith.constant 0 : i32
    %137 = tpu.memref_slice %arg4[%c0_i32_73, %c0_i32_76] : memref<64x128xf32, #tpu.memory_space<any>> -> memref<1x128xf32, #tpu.memory_space<any>>
    %138 = tpu.memref_squeeze %137 : memref<1x128xf32, #tpu.memory_space<any>> -> memref<128xf32, #tpu.memory_space<any>>
    %c0_i32_77 = arith.constant 0 : i32
    %139 = tpu.memref_slice %arg10[%c5_i32_74, %c0_i32_77] : memref<8x128xf32, #tpu.memory_space<vmem>> -> memref<1x128xf32, #tpu.memory_space<vmem>>
    %140 = tpu.memref_squeeze %139 : memref<1x128xf32, #tpu.memory_space<vmem>> -> memref<128xf32, #tpu.memory_space<vmem>>
    %141 = tpu.memref_slice %arg11[%c0_i32_75] : memref<1x!tpu.dma_semaphore, #tpu.memory_space<semaphore_mem>> -> memref<1x!tpu.dma_semaphore, #tpu.memory_space<semaphore_mem>>
    %142 = tpu.memref_squeeze %141 : memref<1x!tpu.dma_semaphore, #tpu.memory_space<semaphore_mem>> -> memref<!tpu.dma_semaphore, #tpu.memory_space<semaphore_mem>>
    tpu.wait_dma2 semaphore(%142 : memref<!tpu.dma_semaphore, #tpu.memory_space<semaphore_mem>>) src(%138 : memref<128xf32, #tpu.memory_space<any>>) dst(%140 : memref<128xf32, #tpu.memory_space<vmem>>)
    %c0_i32_78 = arith.constant 0 : i32
    %c6_i32_79 = arith.constant 6 : i32
    %c0_i32_80 = arith.constant 0 : i32
    %c0_i32_81 = arith.constant 0 : i32
    %143 = tpu.memref_slice %arg4[%c0_i32_78, %c0_i32_81] : memref<64x128xf32, #tpu.memory_space<any>> -> memref<1x128xf32, #tpu.memory_space<any>>
    %144 = tpu.memref_squeeze %143 : memref<1x128xf32, #tpu.memory_space<any>> -> memref<128xf32, #tpu.memory_space<any>>
    %c0_i32_82 = arith.constant 0 : i32
    %145 = tpu.memref_slice %arg10[%c6_i32_79, %c0_i32_82] : memref<8x128xf32, #tpu.memory_space<vmem>> -> memref<1x128xf32, #tpu.memory_space<vmem>>
    %146 = tpu.memref_squeeze %145 : memref<1x128xf32, #tpu.memory_space<vmem>> -> memref<128xf32, #tpu.memory_space<vmem>>
    %147 = tpu.memref_slice %arg11[%c0_i32_80] : memref<1x!tpu.dma_semaphore, #tpu.memory_space<semaphore_mem>> -> memref<1x!tpu.dma_semaphore, #tpu.memory_space<semaphore_mem>>
    %148 = tpu.memref_squeeze %147 : memref<1x!tpu.dma_semaphore, #tpu.memory_space<semaphore_mem>> -> memref<!tpu.dma_semaphore, #tpu.memory_space<semaphore_mem>>
    tpu.wait_dma2 semaphore(%148 : memref<!tpu.dma_semaphore, #tpu.memory_space<semaphore_mem>>) src(%144 : memref<128xf32, #tpu.memory_space<any>>) dst(%146 : memref<128xf32, #tpu.memory_space<vmem>>)
    %c0_i32_83 = arith.constant 0 : i32
    %c7_i32_84 = arith.constant 7 : i32
    %c0_i32_85 = arith.constant 0 : i32
    %c0_i32_86 = arith.constant 0 : i32
    %149 = tpu.memref_slice %arg4[%c0_i32_83, %c0_i32_86] : memref<64x128xf32, #tpu.memory_space<any>> -> memref<1x128xf32, #tpu.memory_space<any>>
    %150 = tpu.memref_squeeze %149 : memref<1x128xf32, #tpu.memory_space<any>> -> memref<128xf32, #tpu.memory_space<any>>
    %c0_i32_87 = arith.constant 0 : i32
    %151 = tpu.memref_slice %arg10[%c7_i32_84, %c0_i32_87] : memref<8x128xf32, #tpu.memory_space<vmem>> -> memref<1x128xf32, #tpu.memory_space<vmem>>
    %152 = tpu.memref_squeeze %151 : memref<1x128xf32, #tpu.memory_space<vmem>> -> memref<128xf32, #tpu.memory_space<vmem>>
    %153 = tpu.memref_slice %arg11[%c0_i32_85] : memref<1x!tpu.dma_semaphore, #tpu.memory_space<semaphore_mem>> -> memref<1x!tpu.dma_semaphore, #tpu.memory_space<semaphore_mem>>
    %154 = tpu.memref_squeeze %153 : memref<1x!tpu.dma_semaphore, #tpu.memory_space<semaphore_mem>> -> memref<!tpu.dma_semaphore, #tpu.memory_space<semaphore_mem>>
    tpu.wait_dma2 semaphore(%154 : memref<!tpu.dma_semaphore, #tpu.memory_space<semaphore_mem>>) src(%150 : memref<128xf32, #tpu.memory_space<any>>) dst(%152 : memref<128xf32, #tpu.memory_space<vmem>>)
    %c0_88 = arith.constant 0 : index
    %c0_89 = arith.constant 0 : index
    %155 = vector.load %arg10[%c0_88, %c0_89] : memref<8x128xf32, #tpu.memory_space<vmem>>, vector<8x128xf32>
    %156 = arith.addf %155, %106 : vector<8x128xf32>
    %157 = tpu.iota {dimensions = array<i32: 1>} : vector<8x128xi32>
    %cst_90 = arith.constant dense<0.000000e+00> : vector<8xf32>
    %158 = vector.multi_reduction <add>, %156, %cst_90 [1] : vector<8x128xf32> to vector<8xf32>
    %159 = vector.shape_cast %158 : vector<8xf32> to vector<8x1xf32>
    %cst_91 = arith.constant 3.125000e-02 : f32
    %160 = vector.broadcast %cst_91 : f32 to vector<8x1xf32>
    %161 = arith.mulf %159, %160 : vector<8x1xf32>
    %162 = vector.broadcast %161 : vector<8x1xf32> to vector<8x128xf32>
    %163 = arith.subf %156, %162 : vector<8x128xf32>
    %c32_i32 = arith.constant 32 : i32
    %164 = vector.broadcast %c32_i32 : i32 to vector<8x128xi32>
    %165 = arith.cmpi slt, %157, %164 : vector<8x128xi32>
    %166 = arith.mulf %163, %163 : vector<8x128xf32>
    %cst_92 = arith.constant 0.000000e+00 : f32
    %167 = vector.broadcast %cst_92 : f32 to vector<8x128xf32>
    %168 = arith.select %165, %166, %167 : vector<8x128xi1>, vector<8x128xf32>
    %cst_93 = arith.constant dense<0.000000e+00> : vector<8xf32>
    %169 = vector.multi_reduction <add>, %168, %cst_93 [1] : vector<8x128xf32> to vector<8xf32>
    %170 = vector.shape_cast %169 : vector<8xf32> to vector<8x1xf32>
    %cst_94 = arith.constant 0.0322580636 : f32
    %171 = vector.broadcast %cst_94 : f32 to vector<8x1xf32>
    %172 = arith.mulf %170, %171 : vector<8x1xf32>
    %173 = math.sqrt %172 : vector<8x1xf32>
    %cst_95 = arith.constant 9.99999997E-7 : f32
    %174 = vector.broadcast %cst_95 : f32 to vector<8x1xf32>
    %175 = arith.addf %173, %174 : vector<8x1xf32>
    %176 = tpu.reciprocal %175 {approx = true} : vector<8x1xf32> -> vector<8x1xf32>
    %177 = arith.mulf %175, %176 : vector<8x1xf32>
    %cst_96 = arith.constant 2.000000e+00 : f32
    %178 = vector.broadcast %cst_96 : f32 to vector<8x1xf32>
    %179 = arith.subf %178, %177 : vector<8x1xf32>
    %180 = arith.mulf %176, %179 : vector<8x1xf32>
    %181 = arith.mulf %175, %180 : vector<8x1xf32>
    %cst_97 = arith.constant 2.000000e+00 : f32
    %182 = vector.broadcast %cst_97 : f32 to vector<8x1xf32>
    %183 = arith.subf %182, %181 : vector<8x1xf32>
    %184 = arith.mulf %180, %183 : vector<8x1xf32>
    %c0_98 = arith.constant 0 : index
    %c0_99 = arith.constant 0 : index
    %185 = vector.load %arg7[%c0_98, %c0_99] : memref<1x128xf32, #tpu.memory_space<vmem>>, vector<1x128xf32>
    %186 = vector.broadcast %184 : vector<8x1xf32> to vector<8x128xf32>
    %187 = arith.mulf %163, %186 : vector<8x128xf32>
    %188 = vector.broadcast %185 : vector<1x128xf32> to vector<8x128xf32>
    %189 = arith.mulf %188, %187 : vector<8x128xf32>
    %c0_100 = arith.constant 0 : index
    %c0_101 = arith.constant 0 : index
    %190 = vector.load %arg8[%c0_100, %c0_101] : memref<1x128xf32, #tpu.memory_space<vmem>>, vector<1x128xf32>
    %191 = vector.broadcast %190 : vector<1x128xf32> to vector<8x128xf32>
    %192 = arith.addf %189, %191 : vector<8x128xf32>
    %c0_102 = arith.constant 0 : index
    %c0_103 = arith.constant 0 : index
    %193 = vector.load %arg9[%c0_102, %c0_103] : memref<8x128xf32, #tpu.memory_space<vmem>>, vector<8x128xf32>
    tpu.vector_store %arg9[%c0_102, %c0_103], %192 {strides = array<i32>} : memref<8x128xf32, #tpu.memory_space<vmem>>, vector<8x128xf32>,
    return
  }
  func.func @transform_0(%arg0: i32, %arg1: i32, %arg2: memref<16xi32, #tpu.memory_space<smem>>) -> (i32, i32) {
    %c1_i32 = arith.constant 1 : i32
    %0 = arith.muli %arg0, %c1_i32 : i32
    %1 = arith.addi %0, %arg1 : i32
    %c0_i32 = arith.constant 0 : i32
    %c0_i32_0 = arith.constant 0 : i32
    return %1, %c0_i32 : i32, i32
  }
  func.func @transform_2(%arg0: i32, %arg1: i32, %arg2: memref<16xi32, #tpu.memory_space<smem>>) -> (i32, i32) {
    %c0_i32 = arith.constant 0 : i32
    %c0_i32_0 = arith.constant 0 : i32
    return %arg1, %c0_i32 : i32, i32
  }
  func.func @transform_3(%arg0: i32, %arg1: i32, %arg2: memref<16xi32, #tpu.memory_space<smem>>) -> (i32, i32) {
    %c0_i32 = arith.constant 0 : i32
    %c0_i32_0 = arith.constant 0 : i32
    %c0_i32_1 = arith.constant 0 : i32
    return %c0_i32, %c0_i32_0 : i32, i32
  }
  func.func @transform_4(%arg0: i32, %arg1: i32, %arg2: memref<16xi32, #tpu.memory_space<smem>>) -> (i32, i32) {
    %c0_i32 = arith.constant 0 : i32
    %c0_i32_0 = arith.constant 0 : i32
    %c0_i32_1 = arith.constant 0 : i32
    return %c0_i32, %c0_i32_0 : i32, i32
  }
  func.func @transform_5(%arg0: i32, %arg1: i32, %arg2: memref<16xi32, #tpu.memory_space<smem>>) -> (i32, i32) {
    %c0_i32 = arith.constant 0 : i32
    %c0_i32_0 = arith.constant 0 : i32
    %c0_i32_1 = arith.constant 0 : i32
    return %c0_i32, %c0_i32_0 : i32, i32
  }
  func.func @transform_6(%arg0: i32, %arg1: i32, %arg2: memref<16xi32, #tpu.memory_space<smem>>) -> (i32, i32) {
    %c1_i32 = arith.constant 1 : i32
    %0 = arith.muli %arg0, %c1_i32 : i32
    %1 = arith.addi %0, %arg1 : i32
    %c0_i32 = arith.constant 0 : i32
    %c0_i32_0 = arith.constant 0 : i32
    return %1, %c0_i32 : i32, i32
  }
}

</mosaic_0001>

<bundles_post_ra>
// kernel: tpu_custom_call.1
= control target key start
LH: loop header
LB: loop body
LE: loop exit
PB: predicated region body
PF: predicated region fallthrough
CT: control target
= control target key end

     0   :  { %s1302_s0 = inlined_call_operand.vmem [shape: s32[16], index: 0, kind: input, shape index: {}]   ;;  %s1303_s1 = inlined_call_operand.vmem [shape: s32[16,1], index: 1, kind: input, shape index: {}]   ;;  %s1304_s2 = inlined_call_operand.hbm [shape: f32[64,128], index: 2, kind: input, shape index: {}]   ;;  %s1305_s3 = inlined_call_operand.vmem [shape: f32[16,128], index: 3, kind: input, shape index: {}]   ;;  %s1306_s4 = inlined_call_operand.vmem [shape: f32[3,128], index: 4, kind: input, shape index: {}]   ;;  %s1307_s5 = inlined_call_operand.vmem [shape: f32[1,128], index: 5, kind: input, shape index: {}]   ;;  %s1308_s6 = inlined_call_operand.vmem [shape: f32[1,128], index: 6, kind: input, shape index: {}]   ;;  %s1309_s7 = inlined_call_operand.hbm [shape: f32[16,128], index: 7, kind: output, shape index: {}]  }
   0x1   :  { %1318 = sst [smem:[#allocation36_spill]] %s1303_s1  ;;  %s12_s26 = sshll.u32 %s1302_s0, 4  ;;  %s13_s26 = int_to_ptr.vmem [resolvable:$true] %s12_s26 }
   0x2   :  { %s722_s27 = scalar_lea.vmem %s13_s26, 16  ;;  %p727_p1 = scmp.lt.s32.totalorder %s13_s26, %s13_s26 }
   0x3   :  { %p723_p0 = scmp.ne.s32.totalorder %s13_s26, %s722_s27  ;;  %p728_p2 = scmp.lt.s32.totalorder %s722_s27, %s722_s27 }
   0x5   :  { %p729_p3 = por %p728_p2, %p727_p1 }
   0x7   :  { %p730_p4 = pnand %p729_p3, %p723_p0 }
   0x9   :  { %733 = shalt.err (!%p730_p4)  }
   0xa   :  { %s992_s28 = smov [#allocation5]  }
   0xb   :  { %15 = dma.vmem_to_smem %s13_s26, 16, %s992_s28, [#allocation4] }
   0xc   :  { %960 = dma.done.wait [#allocation4], 16 }
   0xd   :  { %961 = vsyncadd [#allocation4], 4294967280 }
   0xe   :  { %17 = sfence }
   0xf   :  { %18 = vsyncpa [#allocation7], 0 }
  0x10   :  { %20 = vsyncpa [#allocation7 + $0x1], 0  ;;  %s1047_s29 = smov 0   ;;  %s1049_s30 = smov 0  }
  0x11   :  { %s1051_s0 = smov 0   ;;  %s1053_s8 = smov 0  }
  0x12   :  { %s1055_s9 = smov 0   ;;  %s1057_s10 = smov 0  }
  0x13 LB: > { %1319 = sst [smem:[#allocation29_spill]] %s970_s29  ;;  %s623_s11 = sadd.s32 4294967295, %s990_s10   ;;  %s990_s10 = sphi %s1057_s10, %s26_s10   ;;  %s986_s9 = sphi %s1055_s9, %s1336_s9   ;;  %s982_s8 = sphi %s1053_s8, %s1335_s8   ;;  %s978_s0 = sphi %s1051_s0, %s1334_s0   ;;  %s974_s30 = sphi %s1049_s30, %s1338_s30   ;;  %s970_s29 = sphi %s1047_s29, %s1337_s29  }
  0x14   : > { %1320 = sst [smem:[#allocation30_spill]] %s978_s0  ;;  %s624_s12 = sadd.s32 4294967294, %s990_s10  }
  0x15   : > { %1321 = sst [smem:[#allocation31_spill]] %s986_s9  ;;  %s38_s13 = sadd.s32 1, %s986_s9 }
  0x16   : > { %1322 = sst [smem:[#allocation32_spill]] %s990_s10  ;;  %s164_s14 = sadd.s32 1, %s978_s0 }
  0x17   : > { %p40_p5 = scmp.ge.s32.totalorder %s38_s13, 2  ;;  %p174_p6 = scmp.ne.s32.totalorder %s978_s0, %s974_s30 }
  0x18   : > { %p175_p7 = scmp.eq.s32.totalorder %s623_s11, 1  ;;  %p180_p8 = scmp.ne.s32.totalorder %s974_s30, %s970_s29 }
  0x19   : > { %s1340_s13 = smov (%p40_p5, %s38_s13), 0  ;;  %p181_p10 = scmp.eq.s32.totalorder %s624_s12, 1 }
  0x1a   : > { %1323 = sst [smem:[#allocation33_spill]] %s1340_s13  ;;  %p1087_p9 = por %p175_p7, %p174_p6 }
  0x1b   : > { %s161_s16 = ssub.s32 %s986_s9, %s1340_s13  ;;  %p628_p11 = scmp.ge.s32.totalorder %s990_s10, 1 }
  0x1c   : > { %p162_p12 = scmp.eq.s32.totalorder %s161_s16, 0  ;;  %p1094_p13 = por %p181_p10, %p180_p8 }
  0x1d   : > { %p224_p0 = scmp.lt.s32.totalorder %s990_s10, 3 }
  0x1e   : > { %s1325_s17 = scalar_select %p1094_p13, 1, 0 }
  0x1f   : > { %s1100_s18 = scalar_select %p162_p12, %s978_s0, %s164_s14  }
  0x20   : > { %1326 = sst [smem:[#allocation34_spill]] %s1325_s17  ;;  %p225_p1 = pnand %p628_p11, %p224_p0 }
  0x21   : > { %1327 = sst [smem:[#allocation35_spill]] %s1100_s18  ;;  %p257_p2 = scmp.lt.s32.totalorder (!%p225_p1), %s982_s8, 1 }
  0x22   : > { %228 = sbr.rel (%p225_p1) target bundleno = 566 (0x236), region = 40  ;;  %s1104_s19 = sshll.u32 (!%p225_p1), %s982_s8, 3 }
  0x23   : > { %s270_s21 = sld [smem:[#allocation5 + %s1104_s19]] (!%p225_p1)  ;;  %s994_s23 = smov (!%p225_p1), [#allocation2]  }
  0x24   : > { %s280_s24 = sshll.u32 (!%p225_p1), %s994_s23, 4  ;;  %s1328_s1 = sld [smem:[#allocation36_spill]] (!%p225_p1)  ;;  %s1111_s24 = int_to_ptr.vmem [resolvable:$true] %s280_s24 }
  0x25   : > { %s284_s28 = sadd.s32 (!%p225_p1), 1, %s1104_s19  ;;  %s1311_s11 = sand.u32 (!%p225_p1), 1, %s974_s30  }
  0x26   : > { %s1115_s12 = sld [smem:[#allocation5 + %s284_s28]] (!%p225_p1)  ;;  %s1119_s14 = sshll.u32 (!%p225_p1), %s1311_s11, 3 }
  0x27   : > { %v993_v0 = vmov 0   ;;  %s258_s20 = scalar_select %p257_p2, %s982_s8, 1  ;;  %v995_v2 = vmov 0.0  }
  0x28   : > { %716 = vset.pattern.permute.xlu0 %v993_v0  ;;  %717 = vset.pattern.permute.xlu1 %v993_v0  ;;  %s996_s16 = smov [#allocation2 + $0x1]   ;;  %s1129_s13 = scalar_lea.hbm %s1304_s2, 1024 }
  0x29   : > { %s630_s22 = sshll.u32 %s258_s20, 3  ;;  %s296_s20 = sshll.u32 %s996_s16, 4  ;;  %s1124_s20 = int_to_ptr.vmem [resolvable:$true] %s296_s20 }
  0x2a   : > { %s260_s27 = scalar_lea.vmem %s1328_s1, %s630_s22  ;;  %s632_s22 = sshll.u32 %s270_s21, 4 }
  0x2b   : > { %v396_v1 = vld [vmem:[%s260_s27] sm:$0xff]  ;;  %s272_s26 = scalar_lea.hbm %s1304_s2, %s632_s22 }
  0x2c   : > { %vm399_vm0 = vcmp.eq.s32.totalorder %v396_v1, 0  ;;  %vm413_vm1 = vcmp.eq.s32.totalorder %v396_v1, 1  ;;  %vm427_vm2 = vcmp.eq.s32.totalorder %v396_v1, 2  ;;  %s734_s27 = scalar_lea.hbm %s272_s26, 16  ;;  %p737_p4 = scmp.lt.s32.totalorder %s272_s26, %s1304_s2 }
  0x2d   : > { %v400_v3 = vsel %vm399_vm0, 1.0, %v995_v2  ;;  %v428_v4 = vsel %vm427_vm2, 1.0, %v995_v2  ;;  %v414_v5 = vsel %vm413_vm1, 1.0, %v995_v2  ;;  %p735_p3 = scmp.ne.s32.totalorder %s272_s26, %s734_s27  ;;  %p738_p5 = scmp.lt.s32.totalorder %s1129_s13, %s734_s27 }
  0x2e   : > { %403 = vperm.xlu0 %716, %v400_v3   ;;  %431 = vperm.xlu1 %717, %v428_v4  }
  0x2f   : > { %p739_p6 = por %p738_p5, %p737_p4 }
  0x31   : > { %p740_p7 = pnand %p739_p6, %p735_p3 }
  0x33   : > { %743 = shalt.err (!%p740_p7)  }
  0x34   : > { %s744_s21 = scalar_lea.vmem %s1111_s24, 16  ;;  %s1138_s16 = scalar_lea.vmem %s1111_s24, 128 }
  0x35   : > { %p745_p8 = scmp.ne.s32.totalorder %s1111_s24, %s744_s21  ;;  %p749_p10 = scmp.lt.s32.totalorder %s1111_s24, %s1111_s24 }
  0x36   : > { %p750_p11 = scmp.lt.s32.totalorder %s1138_s16, %s744_s21 }
  0x38   : > { %p751_p12 = por %p750_p11, %p749_p10 }
  0x3a   : > { %p752_p0 = pnand %p751_p12, %p745_p8 }
  0x3c   : > { %755 = shalt.err (!%p752_p0)  }
  0x3d   : > { %283 = dma.hbm_to_vmem [thread:$0]  %s272_s26, 16, %s1111_s24, [#allocation3]  ;;  %417 = vperm.xlu0 %716, %v414_v5  }
  0x3e   : > { %s300_s1 = sadd.s32 2, %s1104_s19  ;;  %s633_s9 = sshll.u32 %s1115_s12, 4 }
  0x3f   : > { %s301_s11 = sld [smem:[#allocation5 + %s300_s1]]  ;;  %s287_s25 = scalar_lea.hbm %s1304_s2, %s633_s9 }
  0x40   : > { %s997_s27 = smov [#allocation2 + $0x2]   ;;  %s756_s18 = scalar_lea.hbm %s287_s25, 16 }
  0x41   : > { %s312_s28 = sshll.u32 %s997_s27, 4  ;;  %p757_p1 = scmp.ne.s32.totalorder %s287_s25, %s756_s18  ;;  %s313_s28 = int_to_ptr.vmem [resolvable:$true] %s312_s28 }
  0x42   : > { %p759_p2 = scmp.lt.s32.totalorder %s287_s25, %s1304_s2  ;;  %p760_p3 = scmp.lt.s32.totalorder %s1129_s13, %s756_s18 }
  0x44   : > { %p761_p4 = por %p760_p3, %p759_p2 }
  0x46   : > { %p762_p5 = pnand %p761_p4, %p757_p1 }
  0x48   : > { %765 = shalt.err (!%p762_p5)  }
  0x49   : > { %s766_s12 = scalar_lea.vmem %s1124_s20, 16  ;;  %p771_p7 = scmp.lt.s32.totalorder %s1124_s20, %s1111_s24 }
  0x4a   : > { %p767_p6 = scmp.ne.s32.totalorder %s1124_s20, %s766_s12  ;;  %p772_p8 = scmp.lt.s32.totalorder %s1138_s16, %s766_s12 }
  0x4c   : > { %p773_p10 = por %p772_p8, %p771_p7 }
  0x4e   : > { %p774_p11 = pnand %p773_p10, %p767_p6 }
  0x50   : > { %777 = shalt.err (!%p774_p11)  }
  0x51   : > { %299 = dma.hbm_to_vmem [thread:$0]  %s287_s25, 16, %s1124_s20, [#allocation3] }
  0x52   : > { %s316_s0 = sadd.s32 3, %s1104_s19  ;;  %s998_s26 = smov [#allocation2 + $0x3]  }
  0x53   : > { %s317_s18 = sld [smem:[#allocation5 + %s316_s0]]  ;;  %s328_s1 = sshll.u32 %s998_s26, 4  ;;  %s1161_s1 = int_to_ptr.vmem [resolvable:$true] %s328_s1 }
  0x54   : > { %s332_s9 = sadd.s32 4, %s1104_s19  ;;  %s634_s22 = sshll.u32 %s301_s11, 4 }
  0x55   : > { %s303_s21 = scalar_lea.hbm %s1304_s2, %s634_s22  ;;  %s1166_s12 = sld [smem:[#allocation5 + %s332_s9]] }
  0x56   : > { %s778_s17 = scalar_lea.hbm %s303_s21, 16  ;;  %p781_p0 = scmp.lt.s32.totalorder %s303_s21, %s1304_s2 }
  0x57   : > { %p779_p12 = scmp.ne.s32.totalorder %s303_s21, %s778_s17  ;;  %p782_p1 = scmp.lt.s32.totalorder %s1129_s13, %s778_s17 }
  0x59   : > { %p783_p2 = por %p782_p1, %p781_p0 }
  0x5b   : > { %p784_p3 = pnand %p783_p2, %p779_p12 }
  0x5d   : > { %787 = shalt.err (!%p784_p3)  }
  0x5e   : > { %s788_s20 = scalar_lea.vmem %s313_s28, 16  ;;  %p793_p5 = scmp.lt.s32.totalorder %s313_s28, %s1111_s24 }
  0x5f   : > { %p789_p4 = scmp.ne.s32.totalorder %s313_s28, %s788_s20  ;;  %p794_p6 = scmp.lt.s32.totalorder %s1138_s16, %s788_s20 }
  0x61   : > { %p795_p7 = por %p794_p6, %p793_p5 }
  0x63   : > { %p796_p8 = pnand %p795_p7, %p789_p4 }
  0x65   : > { %799 = shalt.err (!%p796_p8)  }
  0x66   : > { %315 = dma.hbm_to_vmem [thread:$0]  %s303_s21, 16, %s313_s28, [#allocation3] }
  0x67   : > { %s348_s11 = sadd.s32 5, %s1104_s19  ;;  %s635_s25 = sshll.u32 %s317_s18, 4 }
  0x68   : > { %s999_s29 = smov [#allocation2 + $0x4]   ;;  %s319_s26 = scalar_lea.hbm %s1304_s2, %s635_s25 }
  0x69   : > { %s344_s10 = sshll.u32 %s999_s29, 4  ;;  %s800_s9 = scalar_lea.hbm %s319_s26, 16  ;;  %s1178_s10 = int_to_ptr.vmem [resolvable:$true] %s344_s10 }
  0x6a   : > { %p801_p10 = scmp.ne.s32.totalorder %s319_s26, %s800_s9  ;;  %p803_p11 = scmp.lt.s32.totalorder %s319_s26, %s1304_s2 }
  0x6b   : > { %p804_p12 = scmp.lt.s32.totalorder %s1129_s13, %s800_s9 }
  0x6d   : > { %p805_p0 = por %p804_p12, %p803_p11 }
  0x6f   : > { %p806_p1 = pnand %p805_p0, %p801_p10 }
  0x71   : > { %809 = shalt.err (!%p806_p1)  }
  0x72   : > { %s810_s28 = scalar_lea.vmem %s1161_s1, 16  ;;  %p815_p3 = scmp.lt.s32.totalorder %s1161_s1, %s1111_s24 }
  0x73   : > { %p811_p2 = scmp.ne.s32.totalorder %s1161_s1, %s810_s28  ;;  %p816_p4 = scmp.lt.s32.totalorder %s1138_s16, %s810_s28 }
  0x75   : > { %p817_p5 = por %p816_p4, %p815_p3 }
  0x77   : > { %p818_p6 = pnand %p817_p5, %p811_p2 }
  0x79   : > { %821 = shalt.err (!%p818_p6)  }
  0x7a   : > { %331 = dma.hbm_to_vmem [thread:$0]  %s319_s26, 16, %s1161_s1, [#allocation3] }
  0x7b   : > { %s636_s18 = sshll.u32 %s1166_s12, 4  ;;  %s349_s27 = sld [smem:[#allocation5 + %s348_s11]] }
  0x7c   : > { %s335_s25 = scalar_lea.hbm %s1304_s2, %s636_s18 }
  0x7d   : > { %s822_s29 = scalar_lea.hbm %s335_s25, 16  ;;  %p825_p8 = scmp.lt.s32.totalorder %s335_s25, %s1304_s2 }
  0x7e   : > { %p823_p7 = scmp.ne.s32.totalorder %s335_s25, %s822_s29  ;;  %p826_p10 = scmp.lt.s32.totalorder %s1129_s13, %s822_s29 }
  0x80   : > { %p827_p11 = por %p826_p10, %p825_p8 }
  0x82   : > { %p828_p12 = pnand %p827_p11, %p823_p7 }
  0x84   : > { %831 = shalt.err (!%p828_p12)  }
  0x85   : > { %s832_s1 = scalar_lea.vmem %s1178_s10, 16  ;;  %p837_p1 = scmp.lt.s32.totalorder %s1178_s10, %s1111_s24 }
  0x86   : > { %p833_p0 = scmp.ne.s32.totalorder %s1178_s10, %s832_s1  ;;  %p838_p2 = scmp.lt.s32.totalorder %s1138_s16, %s832_s1 }
  0x88   : > { %p839_p3 = por %p838_p2, %p837_p1 }
  0x8a   : > { %p840_p4 = pnand %p839_p3, %p833_p0 }
  0x8c   : > { %843 = shalt.err (!%p840_p4)  }
  0x8d   : > { %347 = dma.hbm_to_vmem [thread:$0]  %s335_s25, 16, %s1178_s10, [#allocation3] }
  0x8e   : > { %s1000_s12 = smov [#allocation2 + $0x5]   ;;  %s364_s26 = sadd.s32 6, %s1104_s19 }
  0x8f   : > { %s360_s11 = sshll.u32 %s1000_s12, 4  ;;  %s365_s9 = sld [smem:[#allocation5 + %s364_s26]]  ;;  %s361_s11 = int_to_ptr.vmem [resolvable:$true] %s360_s11 }
  0x90   : > { %s380_s22 = sadd.s32 7, %s1104_s19  ;;  %s637_s23 = sshll.u32 %s349_s27, 4 }
  0x91   : > { %s1001_s28 = smov [#allocation2 + $0x6]   ;;  %s351_s29 = scalar_lea.hbm %s1304_s2, %s637_s23 }
  0x92   : > { %s376_s18 = sshll.u32 %s1001_s28, 4  ;;  %s844_s17 = scalar_lea.hbm %s351_s29, 16  ;;  %s1209_s18 = int_to_ptr.vmem [resolvable:$true] %s376_s18 }
  0x93   : > { %p845_p5 = scmp.ne.s32.totalorder %s351_s29, %s844_s17  ;;  %p847_p6 = scmp.lt.s32.totalorder %s351_s29, %s1304_s2 }
  0x94   : > { %p848_p7 = scmp.lt.s32.totalorder %s1129_s13, %s844_s17 }
  0x96   : > { %p849_p8 = por %p848_p7, %p847_p6 }
  0x98   : > { %p850_p10 = pnand %p849_p8, %p845_p5 }
  0x9a   : > { %853 = shalt.err (!%p850_p10)  }
  0x9b   : > { %s854_s19 = scalar_lea.vmem %s361_s11, 16  ;;  %p859_p12 = scmp.lt.s32.totalorder %s361_s11, %s1111_s24 }
  0x9c   : > { %p855_p11 = scmp.ne.s32.totalorder %s361_s11, %s854_s19  ;;  %p860_p0 = scmp.lt.s32.totalorder %s1138_s16, %s854_s19 }
  0x9e   : > { %p861_p1 = por %p860_p0, %p859_p12 }
  0xa0   : > { %p862_p2 = pnand %p861_p1, %p855_p11 }
  0xa2   : > { %865 = shalt.err (!%p862_p2)  }
  0xa3   : > { %363 = dma.hbm_to_vmem [thread:$0]  %s351_s29, 16, %s361_s11, [#allocation3] }
  0xa4   : > { %s381_s10 = sld [smem:[#allocation5 + %s380_s22]]  ;;  %s638_s27 = sshll.u32 %s365_s9, 4 }
  0xa5   : > { %s367_s26 = scalar_lea.hbm %s1304_s2, %s638_s27  ;;  %s1002_s23 = smov [#allocation2 + $0x7]  }
  0xa6   : > { %s392_s28 = sshll.u32 %s1002_s23, 4  ;;  %s866_s21 = scalar_lea.hbm %s367_s26, 16  ;;  %s393_s28 = int_to_ptr.vmem [resolvable:$true] %s392_s28 }
  0xa7   : > { %p867_p3 = scmp.ne.s32.totalorder %s367_s26, %s866_s21  ;;  %p869_p4 = scmp.lt.s32.totalorder %s367_s26, %s1304_s2 }
  0xa8   : > { %p870_p5 = scmp.lt.s32.totalorder %s1129_s13, %s866_s21 }
  0xaa   : > { %p871_p6 = por %p870_p5, %p869_p4 }
  0xac   : > { %p872_p7 = pnand %p871_p6, %p867_p3 }
  0xae   : > { %875 = shalt.err (!%p872_p7)  }
  0xaf   : > { %s876_s11 = scalar_lea.vmem %s1209_s18, 16  ;;  %p881_p10 = scmp.lt.s32.totalorder %s1209_s18, %s1111_s24 }
  0xb0   : > { %p877_p8 = scmp.ne.s32.totalorder %s1209_s18, %s876_s11  ;;  %p882_p11 = scmp.lt.s32.totalorder %s1138_s16, %s876_s11 }
  0xb2   : > { %p883_p12 = por %p882_p11, %p881_p10 }
  0xb4   : > { %p884_p0 = pnand %p883_p12, %p877_p8 }
  0xb6   : > { %887 = shalt.err (!%p884_p0)  }
  0xb7   : > { %379 = dma.hbm_to_vmem [thread:$0]  %s367_s26, 16, %s1209_s18, [#allocation3] }
  0xb8   : > { %s639_s9 = sshll.u32 %s381_s10, 4 }
  0xb9   : > { %s383_s0 = scalar_lea.hbm %s1304_s2, %s639_s9 }
  0xba   : > { %s888_s1 = scalar_lea.hbm %s383_s0, 16  ;;  %p891_p2 = scmp.lt.s32.totalorder %s383_s0, %s1304_s2 }
  0xbb   : > { %p889_p1 = scmp.ne.s32.totalorder %s383_s0, %s888_s1  ;;  %p892_p3 = scmp.lt.s32.totalorder %s1129_s13, %s888_s1 }
  0xbd   : > { %p893_p4 = por %p892_p3, %p891_p2 }
  0xbf   : > { %p894_p5 = pnand %p893_p4, %p889_p1 }
  0xc1   : > { %897 = shalt.err (!%p894_p5)  }
  0xc2   : > { %s898_s25 = scalar_lea.vmem %s393_s28, 16  ;;  %p903_p7 = scmp.lt.s32.totalorder %s393_s28, %s1111_s24 }
  0xc3   : > { %p899_p6 = scmp.ne.s32.totalorder %s393_s28, %s898_s25  ;;  %p904_p8 = scmp.lt.s32.totalorder %s1138_s16, %s898_s25 }
  0xc5   : > { %p905_p10 = por %p904_p8, %p903_p7 }
  0xc7   : > { %p906_p11 = pnand %p905_p10, %p899_p6 }
  0xc9   : > { %909 = shalt.err (!%p906_p11)  }
  0xca   : > { %395 = dma.hbm_to_vmem [thread:$0]  %s383_s0, 16, %s393_s28, [#allocation3]  ;;  %v640_v6 = vld [vmem:[%s1306_s4] ss:$0 sm:$0xff]  ;;  %v404_v7 = vpop.permute.xlu0 %403  ;;  %v641_v10 = vld [vmem:[%s1306_s4 + $0x1] ss:$0 sm:$0xff]  ;;  %v432_v12 = vpop.permute.xlu1 %431 }
  0xcb   : > { %v410_v8 = vmul.f32 %v640_v6, %v404_v7  ;;  %v397_v9 = vld [vmem:[%s1305_s3] sm:$0xff]  ;;  %s255_s28 = scalar_lea.vmem [#allocation6], %s1119_s14 }
  0xcc   : > { %v642_v11 = vld [vmem:[%s1306_s4 + $0x2] ss:$0 sm:$0xff] }
  0xcd   : > { %v411_v14 = vadd.f32 %v410_v8, %v397_v9  ;;  %v438_v16 = vmul.f32 %v642_v11, %v432_v12 }
  0xce   : > { %v418_v13 = vpop.permute.xlu0 %417 }
  0xcf   : > { %v424_v15 = vmul.f32 %v641_v10, %v418_v13 }
  0xd1   : > { %v425_v17 = vadd.f32 %v424_v15, %v411_v14 }
  0xd3   : > { %v439_v18 = vadd.f32 %v438_v16, %v425_v17 }
  0xd4   : > { %962 = dma.done.wait [#allocation3], 128 }
  0xd5   : > { %963 = vsyncadd [#allocation3], 4294967168  ;;  %v456_v19 = vld [vmem:[#allocation2] sm:$0xff]  ;;  %v458_v21 = vlaneseq  ;;  %s646_s9 = sshll.u32 %s982_s8, 7  ;;  %s518_s22 = sshll.u32 %s255_s28, 4  ;;  %s519_s22 = int_to_ptr.vmem [resolvable:$true] %s518_s22 }
  0xd6   : > { %v457_v20 = vadd.f32 %v456_v19, %v439_v18  ;;  %v643_v43 = vld [vmem:[%s1307_s5] ss:$0 sm:$0xff]  ;;  %s516_s1 = scalar_lea.hbm %s1309_s7, %s646_s9  ;;  %s1329_s19 = sand.u32 1, %s974_s30  }
  0xd7   : > { %v459_v23 = vand.u32 127, %v458_v21  ;;  %v644_v45 = vld [vmem:[%s1308_s6] ss:$0 sm:$0xff]  ;;  %s504_s27 = scalar_lea.sflag [#allocation7], %s1329_s19  ;;  %s910_s25 = scalar_lea.vmem %s519_s22, 128 }
  0xd8   : > { %460 = vadd.xlane.f32.xlu0 %v457_v20  ;;  %p911_p12 = scmp.ne.s32.totalorder %s519_s22, %s910_s25  ;;  %s1003_s18 = smov [#allocation6]  }
  0xd9   : > { %vm464_vm3 = vcmp.lt.s32.totalorder %v459_v23, 32  ;;  %s914_s8 = sshll.u32 %s1003_s18, 4  ;;  %s915_s8 = int_to_ptr.vmem [resolvable:$false] %s914_s8 }
  0xda   : > { %p912_p0 = pnand %p911_p12, %p1087_p9  ;;  %s916_s10 = scalar_lea.vmem %s915_s8, 256 }
  0xdb   : > { %p917_p2 = scmp.lt.s32.totalorder %s519_s22, %s915_s8  ;;  %p918_p3 = scmp.lt.s32.totalorder %s916_s10, %s910_s25 }
  0xdc   : > { %p913_p1 = pneg %p912_p0 }
  0xdd   : > { %p919_p4 = por %p918_p3, %p917_p2 }
  0xdf   : > { %p920_p5 = pnand %p919_p4, %p913_p1 }
 0x161   : > { %v461_v22 = vpop.xlane.xlu0 %460 }
 0x162   : > { %v462_v24 = vmul.f32 0.03125, %v461_v22 }
 0x164   : > { %v463_v25 = vsub.f32 %v457_v20, %v462_v24 }
 0x166   : > { %v465_v26 = vmul.f32 %v463_v25, %v463_v25 }
 0x168   : > { %v466_v27 = vsel %vm464_vm3, %v465_v26, 0.0 }
 0x169   : > { %467 = vadd.xlane.f32.xlu0 %v466_v27 }
 0x1f2   : > { %v468_v28 = vpop.xlane.xlu0 %467 }
 0x1f3   : > { %v469_v29 = vmul.f32 0.032258064, %v468_v28 }
 0x1f5   : > { %718 = vrsqrt.f32 %v469_v29  ;;  %vm472_vm4 = vcmp.eq.f32.partialorder %v469_v29, inf  ;;  %v475_v32 = vand.u32 2147483648, %v469_v29  ;;  %vm474_vm5 = vcmp.eq.f32.partialorder %v469_v29, 0.0 }
 0x202   : > { %v719_v30 = vpop.eup %718 }
 0x203   : > { %v471_v31 = vmul.f32 %v719_v30, %v469_v29 }
 0x205   : > { %v473_v33 = vsel %vm472_vm4, %v469_v29, %v471_v31 }
 0x206   : > { %v476_v34 = vsel %vm474_vm5, %v475_v32, %v473_v33 }
 0x207   : > { %v477_v35 = vadd.f32 1e-06, %v476_v34 }
 0x209   : > { %720 = vrcp.f32 %v477_v35 }
 0x216   : > { %v721_v36 = vpop.eup %720 }
 0x217   : > { %v479_v37 = vmul.f32 %v721_v36, %v477_v35 }
 0x219   : > { %v480_v38 = vsub.f32 2.0, %v479_v37 }
 0x21b   : > { %v481_v39 = vmul.f32 %v721_v36, %v480_v38 }
 0x21d   : > { %v482_v40 = vmul.f32 %v481_v39, %v477_v35 }
 0x21f   : > { %v483_v41 = vsub.f32 2.0, %v482_v40 }
 0x221   : > { %v484_v42 = vmul.f32 %v483_v41, %v481_v39 }
 0x223   : > { %v486_v44 = vmul.f32 %v484_v42, %v463_v25 }
 0x225   : > { %v493_v46 = vmul.f32 %v643_v43, %v486_v44 }
 0x227   : > { %v501_v47 = vadd.f32 %v644_v45, %v493_v46 }
 0x229   : > { %502 = vst [vmem:[%s255_s28] sm:$0xff] %v501_v47 }
 0x22a   : > { %923 = shalt.err (!%p920_p5)
}
 0x22b   : > { %s924_s13 = scalar_lea.hbm %s516_s1, 128  ;;  %s928_s26 = scalar_lea.hbm %s1309_s7, 256 }
 0x22c   : > { %p925_p6 = scmp.ne.s32.totalorder %s516_s1, %s924_s13  ;;  %p929_p10 = scmp.lt.s32.totalorder %s516_s1, %s1309_s7 }
 0x22d   : > { %p930_p11 = scmp.lt.s32.totalorder %s928_s26, %s924_s13 }
 0x22e   : > { %p926_p7 = pnand %p925_p6, %p1087_p9 }
 0x22f   : > { %p931_p12 = por %p930_p11, %p929_p10 }
 0x230   : > { %p927_p8 = pneg %p926_p7 }
 0x232   : > { %p932_p0 = pnand %p931_p12, %p927_p8 }
 0x234   : > { %935 = shalt.err (!%p932_p0)
}
 0x235   : > { %650 = dma.vmem_to_hbm [thread:$0]  (%p1087_p9), %s519_s22, 128, %s516_s1, %s504_s27  }
 0x236 PF: > { %s1330_s16 = sld [smem:[#allocation32_spill]] }
 0x237   : > { %s1331_s28 = sld [smem:[#allocation29_spill]] }
 0x23c   : > { %p656_p1 = scmp.ge.s32.totalorder %s1330_s16, 2 }
 0x23d   : > { %s530_s20 = sand.u32 1, %s1331_s28  }
 0x23e   : > { %p653_p2 = pnand %p656_p1, %p1094_p13  ;;  %s531_s17 = scalar_lea.sflag [#allocation7], %s530_s20 }
 0x240   : > { %p654_p3 = pneg %p653_p2 }
 0x242   : > { %965 = dma.done.wait (%p654_p3), %s531_s17, 128  }
 0x243   : > { %967 = vsyncadd (%p654_p3), %s531_s17, 4294967168  ;;  %s26_s10 = sadd.s32 1, %s1330_s16   ;;  %s1333_s11 = sld [smem:[#allocation30_spill]] }
 0x244   : > { %p23_p4 = scmp.ge.s32.totalorder %s26_s10, 4   ;;  %s1334_s0 = sld [smem:[#allocation35_spill]] }
 0x245   : > { %s1335_s8 = sld [smem:[#allocation31_spill]]  ;;  %s1337_s29 = smov %s974_s30 }
 0x246   : > { %s1336_s9 = sld [smem:[#allocation33_spill]]  ;;  %25 = sbr.rel (!%p23_p4) target bundleno = 19 (0x13), region = 125 }
 0x249   : > { %s1338_s30 = smov %s1333_s11 }
 0x24b   :  { %536 = vsyncpa [#allocation7], 1 }
 0x24c   :  { %538 = vsyncpa [#allocation7 + $0x1], 1 }
 0x24d   :  { %539 = vsyncmov [#allocation3] }
 0x250   :  { %s540_s15 = vpop.sfrf %539 }
 0x251   :  { %p649_p9 = scmp.ne.s32.totalorder %s540_s15, 0 }
 0x253   :  { %544 = shalt.err (%p649_p9)  }

</bundles_post_ra>
